<compile_context>
chip_gen: v7x
topology: tpu7x:2x2x1
jax: 0.10.0
libtpu: 0.0.40
codegen_flags: <defaults>
</compile_context>

<pallas_src>
import functools

import jax
import jax.numpy as jnp
from jax import lax
from jax.experimental import pallas as pl
from jax.experimental.pallas import tpu as pltpu


def iolinear_kernel(x_ref, w_ref, corr_ref, outw_ref, b_ref, o_ref, acc_ref,
                    *, precision):
    k = pl.program_id(2)

    @pl.when(k == 0)
    def _init():
        acc_ref[...] = jnp.zeros_like(acc_ref)

    # MXU: contract the shared "in" axis of x (bm, bk) and weight (bn, bk);
    # no explicit transpose is materialized (folded into the MXU operand load).
    acc_ref[...] += lax.dot_general(
        x_ref[...], w_ref[...],
        dimension_numbers=(((1,), (1,)), ((), ())),
        preferred_element_type=jnp.float32,
        precision=precision)                      # (bm, bn) f32

    @pl.when(k == pl.num_programs(2) - 1)
    def _finalize():
        corr = corr_ref[...]                      # (bm, 2) f32, precomputed
        y = (acc_ref[...]
             + corr[:, 0:1]                       # (x . in_weight), broadcast over out
             + corr[:, 1:2] * outw_ref[...]       # x.sum(1) * out_weight
             + b_ref[...])                        # bias
        o_ref[...] = y.astype(o_ref.dtype)


def _vmem_capacity_bytes():
    """Physical VMEM of the current chip; conservative fallback (v7x, 64 MiB/TC)."""
    try:
        return int(pltpu.get_tpu_info().vmem_capacity_bytes)
    except Exception:
        return 64 << 20


def _pick_tile(dim, target, align):
    """Largest block <= target that is a multiple of `align` and divides `dim`,
    falling back to the full (untiled) extent when no such divisor exists."""
    if dim <= target:
        return dim
    t = (target // align) * align
    while t >= align:
        if dim % t == 0:
            return t
        t -= align
    return dim


@functools.partial(
    jax.jit, static_argnames=("bm", "bn", "bk", "precision", "weight_buffers"))
def iolinear(x, weight, in_weight, out_weight, bias, *,
             bm=None, bn=None, bk=None, precision=None, weight_buffers=None):
    """x: (B, in), weight: (out, in), in_weight: (in,), out_weight: (out,),
    bias: (out,).  Returns (B, out) in x.dtype.

    x / weight are consumed in their stored dtype (store them in bf16 at rest
    to halve MXU-operand HBM streaming); corrections, bias and the accumulator
    stay f32.  `precision` is forwarded to the MXU matmul (use
    lax.Precision.HIGHEST for strict f32 accuracy at very large in_size).
    """
    B, in_size = x.shape
    out_size, in_size_w = weight.shape
    assert in_size_w == in_size
    out_dtype = x.dtype

    # Rank-1 correction terms, hoisted out of the kernel: one cheap pass over x
    # in XLA produces corr[b] = [x[b] . in_weight, x[b].sum()] in exact f32.
    aux_cols = jnp.stack(
        [in_weight.astype(jnp.float32), jnp.ones((in_size,), jnp.float32)],
        axis=1)                                                    # (in, 2)
    corr = x.astype(jnp.float32) @ aux_cols                        # (B, 2) f32

    # MXU operands must share a dtype; x is the cheap one to convert.
    if x.dtype != weight.dtype:
        x = x.astype(weight.dtype)
    mxu_dtype = weight.dtype

    vmem_cap = _vmem_capacity_bytes()
    big_vmem = vmem_cap >= (128 << 20)           # v5e / v6e

    # Default tiles: lane-dense, vreg-aligned, sized for reuse (only clamped
    # down to divisors of the problem / the full extent).
    if bm is None:
        bm = _pick_tile(B, 256, 8)
    if bn is None:
        bn = _pick_tile(out_size, 512, 128)
    if bk is None:
        bk = _pick_tile(in_size, 2048 if big_vmem else 1024, 128)
    assert B % bm == 0 and out_size % bn == 0 and in_size % bk == 0, (
        "tile sizes must divide (B, out, in)")

    outw2 = out_weight.reshape(1, out_size).astype(jnp.float32)
    bias2 = bias.reshape(1, out_size).astype(jnp.float32)

    grid = (B // bm, out_size // bn, in_size // bk)   # reduction axis last

    w_spec_kwargs = {}
    n_wbufs = 2
    if weight_buffers is not None and weight_buffers > 2:
        # Deeper weight pipeline for the small-batch weight-streaming regime.
        w_spec_kwargs["pipeline_mode"] = pl.Buffered(weight_buffers)
        n_wbufs = weight_buffers

    # VMEM budget from the actual tile footprint + chip capacity (headroom for
    # compiler-internal scratch).
    esz = jnp.dtype(mxu_dtype).itemsize
    osz = jnp.dtype(out_dtype).itemsize
    footprint = (2 * (bm * bk * esz               # x (double-buffered)
                      + bm * 2 * 4                # corr
                      + 2 * bn * 4)               # out_weight + bias
                 + n_wbufs * bn * bk * esz        # weight
                 + 2 * bm * bn * osz              # output
                 + bm * bn * 4)                   # f32 accumulator scratch
    vmem_limit = int(min(vmem_cap - (16 << 20), max(32 << 20, 2 * footprint)))

    return pl.pallas_call(
        functools.partial(iolinear_kernel, precision=precision),
        out_shape=jax.ShapeDtypeStruct((B, out_size), out_dtype),
        grid_spec=pltpu.PrefetchScalarGridSpec(
            num_scalar_prefetch=0,
            grid=grid,
            in_specs=[
                pl.BlockSpec((bm, bk), lambda i, j, k: (i, k)),          # x
                pl.BlockSpec((bn, bk), lambda i, j, k: (j, k),
                             **w_spec_kwargs),                           # weight (out,in)
                pl.BlockSpec((bm, 2), lambda i, j, k: (i, 0)),           # corrections
                pl.BlockSpec((1, bn), lambda i, j, k: (0, j)),           # out_weight
                pl.BlockSpec((1, bn), lambda i, j, k: (0, j)),           # bias
            ],
            out_specs=pl.BlockSpec((bm, bn), lambda i, j, k: (i, j)),
            scratch_shapes=[
                pltpu.VMEM((bm, bn), jnp.float32),   # matmul accumulator
            ],
        ),
        compiler_params=pltpu.CompilerParams(
            dimension_semantics=("parallel", "parallel", "arbitrary"),
            vmem_limit_bytes=vmem_limit,
        ),
    )(x, weight, corr, outw2, bias2)


if __name__ == "__main__":
    key = jax.random.PRNGKey(0)
    k_x, k_w, k_iw, k_ow, k_b = jax.random.split(key, 5)

    batch, in_size, out_size = 8, 512, 256

    x = jax.random.normal(k_x, (batch, in_size), dtype=jnp.float32)
    weight = jax.random.normal(k_w, (out_size, in_size), dtype=jnp.float32) * 0.1
    # nn.Parameter(torch.zeros(...)) in __init__; use small random values so
    # the in/out broadcast path is actually exercised.
    in_weight = jax.random.normal(k_iw, (in_size,), dtype=jnp.float32) * 0.05
    out_weight = jax.random.normal(k_ow, (out_size,), dtype=jnp.float32) * 0.05
    bias = jax.random.normal(k_b, (out_size,), dtype=jnp.float32) * 0.1

    # Pure-JAX reference of the exact PyTorch semantics.
    W_eff = in_weight[None, :] + weight + out_weight[:, None]
    ref = x @ W_eff.T + bias[None, :]

    # Default tiling (collapses to a single block at this size).
    out = jax.block_until_ready(
        iolinear(x, weight, in_weight, out_weight, bias))
    assert out.shape == (batch, out_size)
    assert jnp.allclose(out, ref, atol=1e-4, rtol=1e-4)

    # Explicit small tiles: grid = (1, 2, 4) exercises out-tiling + k-reduction.
    out_t = jax.block_until_ready(
        iolinear(x, weight, in_weight, out_weight, bias, bm=8, bn=128, bk=128))
    assert jnp.allclose(out_t, ref, atol=1e-4, rtol=1e-4)

    # bf16-at-rest operands: the kernel streams them as-is (half the weight HBM
    # traffic); accumulation, corrections and bias stay f32. Looser tolerance.
    out_bf16 = jax.block_until_ready(
        iolinear(x.astype(jnp.bfloat16), weight.astype(jnp.bfloat16),
                 in_weight, out_weight, bias, bm=8, bn=128, bk=256))
    assert jnp.allclose(out_bf16.astype(jnp.float32), ref, atol=2e-1, rtol=5e-2)

    print("KERNEL_OK")
</pallas_src>

<mosaic_0001>
module attributes {stable_mosaic.version = 11 : i64} {
  func.func @iolinear_kernel(%arg0: i32, %arg1: i32, %arg2: i32, %arg3: memref<8x512xf32, #tpu.memory_space<vmem>>, %arg4: memref<256x512xf32, #tpu.memory_space<vmem>>, %arg5: memref<8x2xf32, #tpu.memory_space<vmem>>, %arg6: memref<1x256xf32, #tpu.memory_space<vmem>>, %arg7: memref<1x256xf32, #tpu.memory_space<vmem>>, %arg8: memref<8x256xf32, #tpu.memory_space<vmem>>, %arg9: memref<8x256xf32, #tpu.memory_space<vmem>>) attributes {dimension_semantics = [#tpu.dimension_semantics<parallel>, #tpu.dimension_semantics<parallel>, #tpu.dimension_semantics<arbitrary>], iteration_bounds = array<i64: 1, 1, 1>, scalar_prefetch = 0 : i64, scratch_operands = 1 : i64, tpu.core_type = #tpu.core_type<tc>, window_params = [{transform_indices = @transform_0, window_bounds = array<i64: 8, 512>}, {transform_indices = @transform_1, window_bounds = array<i64: 256, 512>}, {transform_indices = @transform_2, window_bounds = array<i64: 8, 2>}, {transform_indices = @transform_3, window_bounds = array<i64: 1, 256>}, {transform_indices = @transform_4, window_bounds = array<i64: 1, 256>}, {transform_indices = @transform_5, window_bounds = array<i64: 8, 256>}]} {
    %c0_i32 = arith.constant 0 : i32
    %0 = arith.cmpi eq, %arg2, %c0_i32 : i32
    %1 = arith.extui %0 : i1 to i32
    %c0_i32_0 = arith.constant 0 : i32
    %2 = arith.cmpi ne, %1, %c0_i32_0 : i32
    scf.if %2 {
      %cst_10 = arith.constant 0.000000e+00 : f32
      %12 = vector.broadcast %cst_10 : f32 to vector<8x256xf32>
      %c0_11 = arith.constant 0 : index
      %c0_12 = arith.constant 0 : index
      %13 = vector.load %arg9[%c0_11, %c0_12] : memref<8x256xf32, #tpu.memory_space<vmem>>, vector<8x256xf32>
      tpu.vector_store %arg9[%c0_11, %c0_12], %12 {strides = array<i32>} : memref<8x256xf32, #tpu.memory_space<vmem>>, vector<8x256xf32>,
    } else {
    }
    %c0 = arith.constant 0 : index
    %c0_1 = arith.constant 0 : index
    %3 = vector.load %arg9[%c0, %c0_1] : memref<8x256xf32, #tpu.memory_space<vmem>>, vector<8x256xf32>
    %c0_2 = arith.constant 0 : index
    %c0_3 = arith.constant 0 : index
    %4 = vector.load %arg3[%c0_2, %c0_3] : memref<8x512xf32, #tpu.memory_space<vmem>>, vector<8x512xf32>
    %c0_4 = arith.constant 0 : index
    %c0_5 = arith.constant 0 : index
    %5 = vector.load %arg4[%c0_4, %c0_5] : memref<256x512xf32, #tpu.memory_space<vmem>>, vector<256x512xf32>
    %cst = arith.constant dense<0.000000e+00> : vector<8x256xf32>
    %6 = tpu.matmul %4, %5, %cst {dimension_numbers = #tpu.dot_dimension_numbers<[1], [1], [0], [0], [0, 0, 1, 0], [], []>} : vector<8x512xf32>, vector<256x512xf32>, vector<8x256xf32> -> vector<8x256xf32>
    %7 = arith.addf %3, %6 : vector<8x256xf32>
    %c0_6 = arith.constant 0 : index
    %c0_7 = arith.constant 0 : index
    %8 = vector.load %arg9[%c0_6, %c0_7] : memref<8x256xf32, #tpu.memory_space<vmem>>, vector<8x256xf32>
    tpu.vector_store %arg9[%c0_6, %c0_7], %7 {strides = array<i32>} : memref<8x256xf32, #tpu.memory_space<vmem>>, vector<8x256xf32>,
    %c0_i32_8 = arith.constant 0 : i32
    %9 = arith.cmpi eq, %arg2, %c0_i32_8 : i32
    %10 = arith.extui %9 : i1 to i32
    %c0_i32_9 = arith.constant 0 : i32
    %11 = arith.cmpi ne, %10, %c0_i32_9 : i32
    scf.if %11 {
      %c0_10 = arith.constant 0 : index
      %c0_11 = arith.constant 0 : index
      %12 = vector.load %arg5[%c0_10, %c0_11] : memref<8x2xf32, #tpu.memory_space<vmem>>, vector<8x2xf32>
      %c0_12 = arith.constant 0 : index
      %c0_13 = arith.constant 0 : index
      %13 = vector.load %arg9[%c0_12, %c0_13] : memref<8x256xf32, #tpu.memory_space<vmem>>, vector<8x256xf32>
      %14 = vector.extract_strided_slice %12 {offsets = [0, 0], sizes = [8, 1], strides = [1, 1]} : vector<8x2xf32> to vector<8x1xf32>
      %15 = vector.broadcast %14 : vector<8x1xf32> to vector<8x256xf32>
      %16 = arith.addf %13, %15 : vector<8x256xf32>
      %17 = vector.extract_strided_slice %12 {offsets = [0, 1], sizes = [8, 1], strides = [1, 1]} : vector<8x2xf32> to vector<8x1xf32>
      %c0_14 = arith.constant 0 : index
      %c0_15 = arith.constant 0 : index
      %18 = vector.load %arg6[%c0_14, %c0_15] : memref<1x256xf32, #tpu.memory_space<vmem>>, vector<1x256xf32>
      %19 = vector.broadcast %17 : vector<8x1xf32> to vector<8x256xf32>
      %20 = vector.broadcast %18 : vector<1x256xf32> to vector<8x256xf32>
      %21 = arith.mulf %19, %20 : vector<8x256xf32>
      %22 = arith.addf %16, %21 : vector<8x256xf32>
      %c0_16 = arith.constant 0 : index
      %c0_17 = arith.constant 0 : index
      %23 = vector.load %arg7[%c0_16, %c0_17] : memref<1x256xf32, #tpu.memory_space<vmem>>, vector<1x256xf32>
      %24 = vector.broadcast %23 : vector<1x256xf32> to vector<8x256xf32>
      %25 = arith.addf %22, %24 : vector<8x256xf32>
      %c0_18 = arith.constant 0 : index
      %c0_19 = arith.constant 0 : index
      %26 = vector.load %arg8[%c0_18, %c0_19] : memref<8x256xf32, #tpu.memory_space<vmem>>, vector<8x256xf32>
      tpu.vector_store %arg8[%c0_18, %c0_19], %25 {strides = array<i32>} : memref<8x256xf32, #tpu.memory_space<vmem>>, vector<8x256xf32>,
    } else {
    }
    return
  }
  func.func @transform_0(%arg0: i32, %arg1: i32, %arg2: i32) -> (i32, i32) {
    %c0_i32 = arith.constant 0 : i32
    return %arg0, %arg2 : i32, i32
  }
  func.func @transform_1(%arg0: i32, %arg1: i32, %arg2: i32) -> (i32, i32) {
    %c0_i32 = arith.constant 0 : i32
    return %arg1, %arg2 : i32, i32
  }
  func.func @transform_2(%arg0: i32, %arg1: i32, %arg2: i32) -> (i32, i32) {
    %c0_i32 = arith.constant 0 : i32
    %c0_i32_0 = arith.constant 0 : i32
    return %arg0, %c0_i32 : i32, i32
  }
  func.func @transform_3(%arg0: i32, %arg1: i32, %arg2: i32) -> (i32, i32) {
    %c0_i32 = arith.constant 0 : i32
    %c0_i32_0 = arith.constant 0 : i32
    return %c0_i32, %arg1 : i32, i32
  }
  func.func @transform_4(%arg0: i32, %arg1: i32, %arg2: i32) -> (i32, i32) {
    %c0_i32 = arith.constant 0 : i32
    %c0_i32_0 = arith.constant 0 : i32
    return %c0_i32, %arg1 : i32, i32
  }
  func.func @transform_5(%arg0: i32, %arg1: i32, %arg2: i32) -> (i32, i32) {
    %c0_i32 = arith.constant 0 : i32
    return %arg0, %arg1 : i32, i32
  }
}

</mosaic_0001>

<bundles_post_ra>
// kernel: iolinear.1
= control target key start
LH: loop header
LB: loop body
LE: loop exit
PB: predicated region body
PF: predicated region fallthrough
CT: control target
= control target key end

     0   :  { %10 = vsyncpa [#allocation4], 0  ;;  %s652_s0 = inlined_call_operand.vmem [shape: f32[8,512], index: 0, kind: input, shape index: {}]   ;;  %s653_s1 = inlined_call_operand.hbm [shape: f32[256,512], index: 1, kind: input, shape index: {}]   ;;  %s654_s2 = inlined_call_operand.vmem [shape: f32[8,2], index: 2, kind: input, shape index: {}]   ;;  %s655_s3 = inlined_call_operand.vmem [shape: f32[1,256], index: 3, kind: input, shape index: {}]   ;;  %s656_s4 = inlined_call_operand.vmem [shape: f32[1,256], index: 4, kind: input, shape index: {}]   ;;  %s657_s5 = inlined_call_operand.hbm [shape: f32[8,256], index: 5, kind: output, shape index: {}]  }
   0x1   :  { %11 = vsyncpa [#allocation5], 0  ;;  %s571_s18 = smov [#allocation3]   ;;  %s523_s22 = scalar_lea.hbm %s653_s1, 16384 }
   0x2   :  { %s19_s19 = sshll.u32 %s571_s18, 4  ;;  %p524_p0 = scmp.ne.s32.totalorder %s653_s1, %s523_s22  ;;  %s20_s19 = int_to_ptr.vmem [resolvable:$true] %s19_s19 }
   0x3   :  { %p527_p1 = scmp.lt.u32.totalorder %s523_s22, %s653_s1 }
   0x5   :  { %p529_p2 = pnand %p527_p1, %p524_p0 }
   0x7   :  { %532 = shalt.err (!%p529_p2)
}
   0x8   :  { %s533_s27 = scalar_lea.vmem %s20_s19, 16384  ;;  %p538_p4 = scmp.lt.s32.totalorder %s20_s19, %s20_s19 }
   0x9   :  { %p534_p3 = scmp.ne.s32.totalorder %s20_s19, %s533_s27  ;;  %p539_p5 = scmp.lt.s32.totalorder %s533_s27, %s533_s27 }
   0xb   :  { %p540_p6 = por %p539_p5, %p538_p4 }
   0xd   :  { %p541_p7 = pnand %p540_p6, %p534_p3 }
   0xf   :  { %544 = shalt.err (!%p541_p7)
}
  0x10   :  { %s572_s28 = smov 512   ;;  %s573_s29 = smov 32  }
  0x11   :  { %25 = dma.hbm_to_vmem [thread:$0]  %s653_s1, 16384, %s20_s19, [#allocation4], %s572_s28, %s572_s28, %s573_s29  }
  0x12   :  { %567 = dma.done.wait [#allocation4], 16384  }
  0x13   :  { %568 = vsyncadd [#allocation4], 4294950912  ;;  %v48_v0 = vld [vmem:[#allocation3 + $0x8] sm:$0xff]  ;;  %v50_v2 = vld [vmem:[#allocation3 + $0x18] sm:$0xff]  ;;  %v574_v21 = vmov 0  }
  0x14   :  { %v52_v1 = vld [vmem:[#allocation3 + $0x28] sm:$0xff]  ;;  %v54_v4 = vld [vmem:[#allocation3 + $0x38] sm:$0xff]  ;;  %v47_v5 = vld [vmem:[#allocation3] sm:$0xff]  ;;  %521 = vset.pattern.permute.xlu0 %v574_v21 }
  0x15   :  { %v385_v3 = vpack.c.bf16 %v52_v1, %v48_v0  ;;  %v51_v6 = vld [vmem:[#allocation3 + $0x20] sm:$0xff]  ;;  %v449_v7 = vpack.c.bf16 %v54_v4, %v50_v2  ;;  %v49_v9 = vld [vmem:[#allocation3 + $0x10] sm:$0xff]  ;;  %v56_v11 = vld [vmem:[#allocation3 + $0x48] sm:$0xff] }
  0x16   :  { %v387_v8 = vpack.c.bf16 %v51_v6, %v47_v5  ;;  %v53_v10 = vld [vmem:[#allocation3 + $0x30] sm:$0xff]  ;;  %v60_v13 = vld [vmem:[#allocation3 + $0x68] sm:$0xff]  ;;  %v58_v14 = vld [vmem:[#allocation3 + $0x58] sm:$0xff] }
  0x17   :  { %386 = vmatprep.subr.bf16.mxu1 %v385_v3  ;;  %v451_v12 = vpack.c.bf16 %v53_v10, %v49_v9  ;;  %v62_v15 = vld [vmem:[#allocation3 + $0x78] sm:$0xff]  ;;  %450 = vmatprep.subr.bf16.mxu0 %v449_v7  ;;  %v389_v16 = vpack.c.bf16 %v60_v13, %v56_v11  ;;  %v55_v18 = vld [vmem:[#allocation3 + $0x40] sm:$0xff]  ;;  %v57_v20 = vld [vmem:[#allocation3 + $0x50] sm:$0xff] }
  0x18   :  { %388 = vmatpush1.bf16.xpose.msra.mxu1 %v387_v8  ;;  %v453_v17 = vpack.c.bf16 %v62_v15, %v58_v14  ;;  %v59_v19 = vld [vmem:[#allocation3 + $0x60] sm:$0xff]  ;;  %v61_v22 = vld [vmem:[#allocation3 + $0x70] sm:$0xff]  ;;  %v64_v23 = vld [vmem:[#allocation3 + $0x88] sm:$0xff] }
  0x19   :  { %452 = vmatpush1.bf16.xpose.msra.mxu0 %v451_v12  ;;  %390 = vmatprep.subr.bf16.mxu1 %v389_v16  ;;  %v68_v24 = vld [vmem:[#allocation3 + $0xa8] sm:$0xff]  ;;  %v66_v25 = vld [vmem:[#allocation3 + $0x98] sm:$0xff]  ;;  %v391_v27 = vpack.c.bf16 %v59_v19, %v55_v18  ;;  %v455_v28 = vpack.c.bf16 %v61_v22, %v57_v20  ;;  %v63_v31 = vld [vmem:[#allocation3 + $0x80] sm:$0xff] }
  0x1a   :  { %454 = vmatprep.subr.bf16.mxu0 %v453_v17  ;;  %v70_v26 = vld [vmem:[#allocation3 + $0xb8] sm:$0xff]  ;;  %v393_v29 = vpack.c.bf16 %v68_v24, %v64_v23  ;;  %v67_v32 = vld [vmem:[#allocation3 + $0xa0] sm:$0xff]  ;;  %v65_v33 = vld [vmem:[#allocation3 + $0x90] sm:$0xff] }
  0x1b   :  { %v457_v30 = vpack.c.bf16 %v70_v26, %v66_v25  ;;  %v69_v34 = vld [vmem:[#allocation3 + $0xb0] sm:$0xff]  ;;  %v72_v35 = vld [vmem:[#allocation3 + $0xc8] sm:$0xff]  ;;  %v74_v37 = vld [vmem:[#allocation3 + $0xd8] sm:$0xff]  ;;  %v395_v39 = vpack.c.bf16 %v67_v32, %v63_v31 }
  0x1c   :  { %v76_v36 = vld [vmem:[#allocation3 + $0xe8] sm:$0xff]  ;;  %v78_v38 = vld [vmem:[#allocation3 + $0xf8] sm:$0xff]  ;;  %v459_v40 = vpack.c.bf16 %v69_v34, %v65_v33  ;;  %v71_v43 = vld [vmem:[#allocation3 + $0xc0] sm:$0xff] }
  0x1d   :  { %v397_v41 = vpack.c.bf16 %v76_v36, %v72_v35  ;;  %v461_v42 = vpack.c.bf16 %v78_v38, %v74_v37  ;;  %v75_v44 = vld [vmem:[#allocation3 + $0xe0] sm:$0xff]  ;;  %v73_v45 = vld [vmem:[#allocation3 + $0xd0] sm:$0xff]  ;;  %v80_v47 = vld [vmem:[#allocation3 + $0x108] sm:$0xff] }
  0x1e   :  { %v77_v46 = vld [vmem:[#allocation3 + $0xf0] sm:$0xff]  ;;  %v84_v48 = vld [vmem:[#allocation3 + $0x128] sm:$0xff]  ;;  %v82_v49 = vld [vmem:[#allocation3 + $0x118] sm:$0xff]  ;;  %v399_v51 = vpack.c.bf16 %v75_v44, %v71_v43 }
  0x1f   :  { %v86_v50 = vld [vmem:[#allocation3 + $0x138] sm:$0xff]  ;;  %v463_v52 = vpack.c.bf16 %v77_v46, %v73_v45  ;;  %v401_v53 = vpack.c.bf16 %v84_v48, %v80_v47  ;;  %v79_v55 = vld [vmem:[#allocation3 + $0x100] sm:$0xff]  ;;  %v81_v57 = vld [vmem:[#allocation3 + $0x110] sm:$0xff] }
  0x20   :  { %392 = vmatpush1.bf16.xpose.msra.mxu1 %v391_v27  ;;  %v465_v54 = vpack.c.bf16 %v86_v50, %v82_v49  ;;  %v83_v56 = vld [vmem:[#allocation3 + $0x120] sm:$0xff]  ;;  %v85_v58 = vld [vmem:[#allocation3 + $0x130] sm:$0xff]  ;;  %v88_v59 = vld [vmem:[#allocation3 + $0x148] sm:$0xff] }
  0x21   :  { %456 = vmatpush1.bf16.xpose.msra.mxu0 %v455_v28  ;;  %394 = vmatprep.subr.bf16.mxu1 %v393_v29  ;;  %v92_v60 = vld [vmem:[#allocation3 + $0x168] sm:$0xff]  ;;  %v90_v61 = vld [vmem:[#allocation3 + $0x158] sm:$0xff]  ;;  %v403_v63 = vpack.c.bf16 %v83_v56, %v79_v55  ;;  %v467_v0 = vpack.c.bf16 %v85_v58, %v81_v57  ;;  %v87_v3 = vld [vmem:[#allocation3 + $0x140] sm:$0xff] }
  0x22   :  { %458 = vmatprep.subr.bf16.mxu0 %v457_v30  ;;  %v94_v62 = vld [vmem:[#allocation3 + $0x178] sm:$0xff]  ;;  %v405_v1 = vpack.c.bf16 %v92_v60, %v88_v59  ;;  %v91_v4 = vld [vmem:[#allocation3 + $0x160] sm:$0xff]  ;;  %v89_v5 = vld [vmem:[#allocation3 + $0x150] sm:$0xff]  ;;  %v575_v30 = vmov 1  }
  0x23   :  { %v469_v2 = vpack.c.bf16 %v94_v62, %v90_v61  ;;  %v93_v6 = vld [vmem:[#allocation3 + $0x170] sm:$0xff]  ;;  %v96_v7 = vld [vmem:[#allocation3 + $0x188] sm:$0xff]  ;;  %v98_v9 = vld [vmem:[#allocation3 + $0x198] sm:$0xff]  ;;  %v407_v11 = vpack.c.bf16 %v91_v4, %v87_v3 }
  0x24   :  { %v100_v8 = vld [vmem:[#allocation3 + $0x1a8] sm:$0xff]  ;;  %v102_v10 = vld [vmem:[#allocation3 + $0x1b8] sm:$0xff]  ;;  %v471_v12 = vpack.c.bf16 %v93_v6, %v89_v5  ;;  %v324_v17 = vld [vmem:[%s654_s2] sm:$0xff] }
  0x25   :  { %v409_v13 = vpack.c.bf16 %v100_v8, %v96_v7  ;;  %v473_v14 = vpack.c.bf16 %v102_v10, %v98_v9  ;;  %v44_v15 = vld [vmem:[%s652_s0 + $0x8] sm:$0xff]  ;;  %v46_v16 = vld [vmem:[%s652_s0 + $0x18] sm:$0xff]  ;;  %v95_v18 = vld [vmem:[#allocation3 + $0x180] sm:$0xff]  ;;  %329 = vperm.xlu0 %521, %v324_v17  }
  0x26   :  { %239 = vmatprep.mubr.f32.mxu1 %v44_v15  ;;  %310 = vmatprep.mubr.f32.mxu0 %v46_v16  ;;  %v99_v19 = vld [vmem:[#allocation3 + $0x1a0] sm:$0xff]  ;;  %v97_v20 = vld [vmem:[#allocation3 + $0x190] sm:$0xff]  ;;  %v104_v22 = vld [vmem:[#allocation3 + $0x1c8] sm:$0xff] }
  0x27   :  { %v101_v21 = vld [vmem:[#allocation3 + $0x1b0] sm:$0xff]  ;;  %v108_v23 = vld [vmem:[#allocation3 + $0x1e8] sm:$0xff]  ;;  %v106_v24 = vld [vmem:[#allocation3 + $0x1d8] sm:$0xff]  ;;  %v411_v26 = vpack.c.bf16 %v99_v19, %v95_v18 }
  0x28   :  { %396 = vmatpush1.bf16.xpose.msra.mxu1 %v395_v39  ;;  %v110_v25 = vld [vmem:[#allocation3 + $0x1f8] sm:$0xff]  ;;  %v475_v27 = vpack.c.bf16 %v101_v21, %v97_v20  ;;  %v413_v28 = vpack.c.bf16 %v108_v23, %v104_v22  ;;  %v103_v31 = vld [vmem:[#allocation3 + $0x1c0] sm:$0xff]  ;;  %v105_v33 = vld [vmem:[#allocation3 + $0x1d0] sm:$0xff] }
  0x29   :  { %460 = vmatpush1.bf16.xpose.msra.mxu0 %v459_v40  ;;  %398 = vmatprep.subr.bf16.mxu1 %v397_v41  ;;  %v477_v29 = vpack.c.bf16 %v110_v25, %v106_v24  ;;  %v107_v32 = vld [vmem:[#allocation3 + $0x1e0] sm:$0xff]  ;;  %v109_v34 = vld [vmem:[#allocation3 + $0x1f0] sm:$0xff]  ;;  %v112_v35 = vld [vmem:[#allocation3 + $0x208] sm:$0xff] }
  0x2a   :  { %462 = vmatprep.subr.bf16.mxu0 %v461_v42  ;;  %522 = vset.pattern.permute.xlu0 %v575_v30  ;;  %v116_v36 = vld [vmem:[#allocation3 + $0x228] sm:$0xff]  ;;  %v114_v37 = vld [vmem:[#allocation3 + $0x218] sm:$0xff]  ;;  %v415_v39 = vpack.c.bf16 %v107_v32, %v103_v31  ;;  %v479_v40 = vpack.c.bf16 %v109_v34, %v105_v33  ;;  %v111_v43 = vld [vmem:[#allocation3 + $0x200] sm:$0xff] }
  0x2b   :  { %336 = vperm.xlu0 %522, %v324_v17   ;;  %v118_v38 = vld [vmem:[#allocation3 + $0x238] sm:$0xff]  ;;  %v417_v41 = vpack.c.bf16 %v116_v36, %v112_v35  ;;  %v115_v44 = vld [vmem:[#allocation3 + $0x220] sm:$0xff]  ;;  %v113_v45 = vld [vmem:[#allocation3 + $0x210] sm:$0xff] }
  0x2c   :  { %v481_v42 = vpack.c.bf16 %v118_v38, %v114_v37  ;;  %v117_v46 = vld [vmem:[#allocation3 + $0x230] sm:$0xff]  ;;  %v120_v47 = vld [vmem:[#allocation3 + $0x248] sm:$0xff]  ;;  %v122_v49 = vld [vmem:[#allocation3 + $0x258] sm:$0xff] }
  0x2d   :  { %v124_v48 = vld [vmem:[#allocation3 + $0x268] sm:$0xff]  ;;  %v126_v50 = vld [vmem:[#allocation3 + $0x278] sm:$0xff]  ;;  %v119_v55 = vld [vmem:[#allocation3 + $0x240] sm:$0xff] }
  0x2e   :  { %v123_v56 = vld [vmem:[#allocation3 + $0x260] sm:$0xff]  ;;  %v121_v57 = vld [vmem:[#allocation3 + $0x250] sm:$0xff]  ;;  %v128_v59 = vld [vmem:[#allocation3 + $0x288] sm:$0xff] }
  0x2f   :  { %v125_v58 = vld [vmem:[#allocation3 + $0x270] sm:$0xff]  ;;  %v132_v60 = vld [vmem:[#allocation3 + $0x2a8] sm:$0xff]  ;;  %v130_v61 = vld [vmem:[#allocation3 + $0x298] sm:$0xff] }
  0x30   :  { %400 = vmatpush1.bf16.xpose.msra.mxu1 %v399_v51  ;;  %v419_v51 = vpack.c.bf16 %v115_v44, %v111_v43  ;;  %v134_v62 = vld [vmem:[#allocation3 + $0x2b8] sm:$0xff]  ;;  %v127_v3 = vld [vmem:[#allocation3 + $0x280] sm:$0xff]  ;;  %v129_v5 = vld [vmem:[#allocation3 + $0x290] sm:$0xff] }
  0x31   :  { %464 = vmatpush1.bf16.xpose.msra.mxu0 %v463_v52  ;;  %402 = vmatprep.subr.bf16.mxu1 %v401_v53  ;;  %v483_v52 = vpack.c.bf16 %v117_v46, %v113_v45  ;;  %v421_v53 = vpack.c.bf16 %v124_v48, %v120_v47  ;;  %v131_v4 = vld [vmem:[#allocation3 + $0x2a0] sm:$0xff]  ;;  %v133_v6 = vld [vmem:[#allocation3 + $0x2b0] sm:$0xff]  ;;  %v136_v7 = vld [vmem:[#allocation3 + $0x2c8] sm:$0xff] }
  0x32   :  { %466 = vmatprep.subr.bf16.mxu0 %v465_v54  ;;  %v485_v54 = vpack.c.bf16 %v126_v50, %v122_v49  ;;  %v140_v8 = vld [vmem:[#allocation3 + $0x2e8] sm:$0xff]  ;;  %v138_v9 = vld [vmem:[#allocation3 + $0x2d8] sm:$0xff]  ;;  %v135_v15 = vld [vmem:[#allocation3 + $0x2c0] sm:$0xff] }
  0x33   :  { %v142_v10 = vld [vmem:[#allocation3 + $0x2f8] sm:$0xff]  ;;  %v139_v16 = vld [vmem:[#allocation3 + $0x2e0] sm:$0xff]  ;;  %v137_v17 = vld [vmem:[#allocation3 + $0x2d0] sm:$0xff] }
  0x34   :  { %v141_v18 = vld [vmem:[#allocation3 + $0x2f0] sm:$0xff]  ;;  %v144_v19 = vld [vmem:[#allocation3 + $0x308] sm:$0xff]  ;;  %v146_v21 = vld [vmem:[#allocation3 + $0x318] sm:$0xff]  ;;  %v431_v23 = vpack.c.bf16 %v139_v16, %v135_v15 }
  0x35   :  { %v148_v20 = vld [vmem:[#allocation3 + $0x328] sm:$0xff]  ;;  %v150_v22 = vld [vmem:[#allocation3 + $0x338] sm:$0xff]  ;;  %v495_v24 = vpack.c.bf16 %v141_v18, %v137_v17  ;;  %v149_v30 = vld [vmem:[#allocation3 + $0x330] sm:$0xff] }
  0x36   :  { %v433_v25 = vpack.c.bf16 %v148_v20, %v144_v19  ;;  %v152_v31 = vld [vmem:[#allocation3 + $0x348] sm:$0xff]  ;;  %v154_v33 = vld [vmem:[#allocation3 + $0x358] sm:$0xff]  ;;  %v354_v19 = vld [vmem:[%s656_s4] sm:$0x3] }
  0x37   :  { %v156_v32 = vld [vmem:[#allocation3 + $0x368] sm:$0xff]  ;;  %v158_v34 = vld [vmem:[#allocation3 + $0x378] sm:$0xff] }
  0x38   :  { %404 = vmatpush1.bf16.xpose.msra.mxu1 %v403_v63  ;;  %v423_v63 = vpack.c.bf16 %v123_v56, %v119_v55  ;;  %v437_v37 = vpack.c.bf16 %v156_v32, %v152_v31  ;;  %v501_v38 = vpack.c.bf16 %v158_v34, %v154_v33  ;;  %v160_v43 = vld [vmem:[#allocation3 + $0x388] sm:$0xff]  ;;  %v162_v45 = vld [vmem:[#allocation3 + $0x398] sm:$0xff] }
  0x39   :  { %468 = vmatpush1.bf16.xpose.msra.mxu0 %v467_v0  ;;  %406 = vmatprep.subr.bf16.mxu1 %v405_v1  ;;  %v487_v0 = vpack.c.bf16 %v125_v58, %v121_v57  ;;  %v425_v1 = vpack.c.bf16 %v132_v60, %v128_v59  ;;  %v164_v44 = vld [vmem:[#allocation3 + $0x3a8] sm:$0xff]  ;;  %v166_v46 = vld [vmem:[#allocation3 + $0x3b8] sm:$0xff] }
  0x3a   :  { %470 = vmatprep.subr.bf16.mxu0 %v469_v2  ;;  %v489_v2 = vpack.c.bf16 %v134_v62, %v130_v61  ;;  %v441_v49 = vpack.c.bf16 %v164_v44, %v160_v43  ;;  %v505_v50 = vpack.c.bf16 %v166_v46, %v162_v45  ;;  %v168_v55 = vld [vmem:[#allocation3 + $0x3c8] sm:$0xff]  ;;  %v170_v57 = vld [vmem:[#allocation3 + $0x3d8] sm:$0xff] }
  0x3b   :  { %v172_v56 = vld [vmem:[#allocation3 + $0x3e8] sm:$0xff]  ;;  %v174_v58 = vld [vmem:[#allocation3 + $0x3f8] sm:$0xff] }
  0x3c   :  { %v445_v61 = vpack.c.bf16 %v172_v56, %v168_v55  ;;  %v509_v62 = vpack.c.bf16 %v174_v58, %v170_v57 }
  0x40   :  { %408 = vmatpush1.bf16.xpose.msra.mxu1 %v407_v11  ;;  %v427_v11 = vpack.c.bf16 %v131_v4, %v127_v3 }
  0x41   :  { %472 = vmatpush1.bf16.xpose.msra.mxu0 %v471_v12  ;;  %410 = vmatprep.subr.bf16.mxu1 %v409_v13  ;;  %v491_v12 = vpack.c.bf16 %v133_v6, %v129_v5  ;;  %v429_v13 = vpack.c.bf16 %v140_v8, %v136_v7  ;;  %v43_v5 = vld [vmem:[%s652_s0] sm:$0xff]  ;;  %v45_v6 = vld [vmem:[%s652_s0 + $0x10] sm:$0xff]  ;;  %v340_v7 = vlaneseq  ;;  %s576_s0 = smov [#allocation6]  }
  0x42   :  { %474 = vmatprep.subr.bf16.mxu0 %v473_v14  ;;  %v493_v14 = vpack.c.bf16 %v142_v10, %v138_v9 }
  0x43   :  { %v341_v8 = vshrl.u32 %v340_v7, 7 }
  0x45   :  { %v342_v10 = vsub.s32 0, %v341_v8 }
  0x48   :  { %412 = vmatpush1.bf16.xpose.msra.mxu1 %v411_v26  ;;  %v497_v26 = vpack.c.bf16 %v150_v22, %v146_v21 }
  0x49   :  { %476 = vmatpush1.bf16.xpose.msra.mxu0 %v475_v27  ;;  %414 = vmatprep.subr.bf16.mxu1 %v413_v28  ;;  %v143_v27 = vld [vmem:[#allocation3 + $0x300] sm:$0xff] }
  0x4a   :  { %478 = vmatprep.subr.bf16.mxu0 %v477_v29  ;;  %v147_v28 = vld [vmem:[#allocation3 + $0x320] sm:$0xff]  ;;  %v145_v29 = vld [vmem:[#allocation3 + $0x310] sm:$0xff] }
  0x4b   :  { %v435_v35 = vpack.c.bf16 %v147_v28, %v143_v27  ;;  %v499_v36 = vpack.c.bf16 %v149_v30, %v145_v29 }
  0x50   :  { %416 = vmatpush1.bf16.xpose.msra.mxu1 %v415_v39  ;;  %v151_v39 = vld [vmem:[#allocation3 + $0x340] sm:$0xff] }
  0x51   :  { %480 = vmatpush1.bf16.xpose.msra.mxu0 %v479_v40  ;;  %418 = vmatprep.subr.bf16.mxu1 %v417_v41  ;;  %v155_v40 = vld [vmem:[#allocation3 + $0x360] sm:$0xff]  ;;  %v153_v41 = vld [vmem:[#allocation3 + $0x350] sm:$0xff] }
  0x52   :  { %482 = vmatprep.subr.bf16.mxu0 %v481_v42  ;;  %v157_v42 = vld [vmem:[#allocation3 + $0x370] sm:$0xff]  ;;  %v439_v47 = vpack.c.bf16 %v155_v40, %v151_v39 }
  0x53   :  { %v503_v48 = vpack.c.bf16 %v157_v42, %v153_v41 }
  0x58   :  { %420 = vmatpush1.bf16.xpose.msra.mxu1 %v419_v51  ;;  %v159_v51 = vld [vmem:[#allocation3 + $0x380] sm:$0xff] }
  0x59   :  { %484 = vmatpush1.bf16.xpose.msra.mxu0 %v483_v52  ;;  %422 = vmatprep.subr.bf16.mxu1 %v421_v53  ;;  %v163_v52 = vld [vmem:[#allocation3 + $0x3a0] sm:$0xff]  ;;  %v161_v53 = vld [vmem:[#allocation3 + $0x390] sm:$0xff] }
  0x5a   :  { %486 = vmatprep.subr.bf16.mxu0 %v485_v54  ;;  %v165_v54 = vld [vmem:[#allocation3 + $0x3b0] sm:$0xff]  ;;  %v443_v59 = vpack.c.bf16 %v163_v52, %v159_v51 }
  0x5b   :  { %v507_v60 = vpack.c.bf16 %v165_v54, %v161_v53 }
  0x60   :  { %424 = vmatpush1.bf16.xpose.msra.mxu1 %v423_v63  ;;  %v167_v63 = vld [vmem:[#allocation3 + $0x3c0] sm:$0xff] }
  0x61   :  { %488 = vmatpush1.bf16.xpose.msra.mxu0 %v487_v0  ;;  %426 = vmatprep.subr.bf16.mxu1 %v425_v1  ;;  %v171_v0 = vld [vmem:[#allocation3 + $0x3e0] sm:$0xff]  ;;  %v169_v1 = vld [vmem:[#allocation3 + $0x3d0] sm:$0xff] }
  0x62   :  { %490 = vmatprep.subr.bf16.mxu0 %v489_v2  ;;  %v173_v2 = vld [vmem:[#allocation3 + $0x3f0] sm:$0xff]  ;;  %v447_v3 = vpack.c.bf16 %v171_v0, %v167_v63 }
  0x63   :  { %v511_v4 = vpack.c.bf16 %v173_v2, %v169_v1 }
  0x68   :  { %428 = vmatpush1.bf16.xpose.msra.mxu1 %v427_v11  ;;  %v334_v11 = vld [vmem:[%s655_s3] sm:$0x3]  ;;  %s376_s3 = sshll.u32 %s576_s0, 4  ;;  %s377_s3 = int_to_ptr.vmem [resolvable:$true] %s376_s3 }
  0x69   :  { %492 = vmatpush1.bf16.xpose.msra.mxu0 %v491_v12  ;;  %430 = vmatprep.subr.bf16.mxu1 %v429_v13  ;;  %v346_v12 = vsub.s32 1, %v341_v8  ;;  %v343_v13 = vrot.slane %v334_v11, %v342_v10  ;;  %s545_s19 = scalar_lea.vmem %s377_s3, 256  ;;  %p550_p9 = scmp.lt.s32.totalorder %s377_s3, %s377_s3 }
  0x6a   :  { %494 = vmatprep.subr.bf16.mxu0 %v493_v14  ;;  %p546_p8 = scmp.ne.s32.totalorder %s377_s3, %s545_s19  ;;  %p551_p10 = scmp.lt.s32.totalorder %s545_s19, %s545_s19 }
  0x6b   :  { %v347_v14 = vrot.slane %v334_v11, %v346_v12  ;;  %v363_v28 = vrot.slane %v354_v19, %v346_v12 }
  0x6c   :  { %p552_p11 = por %p551_p10, %p550_p9 }
  0x6e   :  { %p553_p12 = pnand %p552_p11, %p546_p8 }
  0x70   :  { %432 = vmatpush1.bf16.xpose.msra.mxu1 %v431_v23 }
  0x71   :  { %496 = vmatpush1.bf16.xpose.msra.mxu0 %v495_v24  ;;  %434 = vmatprep.subr.bf16.mxu1 %v433_v25 }
  0x72   :  { %498 = vmatprep.subr.bf16.mxu0 %v497_v26  ;;  %v359_v26 = vrot.slane %v354_v19, %v342_v10 }
  0x78   :  { %436 = vmatpush1.bf16.xpose.msra.mxu1 %v435_v35 }
  0x79   :  { %500 = vmatpush1.bf16.xpose.msra.mxu0 %v499_v36  ;;  %438 = vmatprep.subr.bf16.mxu1 %v437_v37 }
  0x7a   :  { %502 = vmatprep.subr.bf16.mxu0 %v501_v38 }
  0x80   :  { %440 = vmatpush1.bf16.xpose.msra.mxu1 %v439_v47 }
  0x81   :  { %504 = vmatpush1.bf16.xpose.msra.mxu0 %v503_v48  ;;  %442 = vmatprep.subr.bf16.mxu1 %v441_v49 }
  0x82   :  { %506 = vmatprep.subr.bf16.mxu0 %v505_v50 }
  0x88   :  { %444 = vmatpush1.bf16.xpose.msra.mxu1 %v443_v59 }
  0x89   :  { %508 = vmatpush1.bf16.xpose.msra.mxu0 %v507_v60  ;;  %446 = vmatprep.subr.bf16.mxu1 %v445_v61 }
  0x8a   :  { %510 = vmatprep.subr.bf16.mxu0 %v509_v62 }
  0x90   :  { %448 = vmatpush1.bf16.xpose.msra.mxu1 %v447_v3 }
  0x91   :  { %512 = vmatpush1.bf16.xpose.msra.mxu0 %v511_v4 }
  0x97   :  { %240 = vmatmul.mubr.f32.vlgmr.msra.gmra.mrb[0].mxu1 %v43_v5 }
  0x98   :  { %311 = vmatmul.mubr.f32.vlgmr.msra.gmra.mrb[0].mxu0 %v45_v6 }
  0xa4   :  { %v330_v9 = vpop.permute.xlu0 %329 }
  0xaa   :  { %v337_v15 = vpop.permute.xlu0 %336 }
  0xab   :  { %v350_v22 = vmul.f32 %v343_v13, %v337_v15  ;;  %v351_v24 = vmul.f32 %v347_v14, %v337_v15 }
 0x16a   :  { %v241_v16 = vpop.f32.mrb[0].mxu1 }
 0x16b   :  { %v312_v17 = vpop.f32.mrb[0].mxu0  ;;  %v243_v18 = vpop.f32.mrb[1].mxu1 }
 0x16c   :  { %v313_v20 = vadd.f32 %v312_v17, %v241_v16  ;;  %v314_v21 = vpop.f32.mrb[1].mxu0 }
 0x16d   :  { %v315_v23 = vadd.f32 %v314_v21, %v243_v18 }
 0x16e   :  { %v332_v25 = vadd.f32 %v330_v9, %v313_v20 }
 0x16f   :  { %v333_v27 = vadd.f32 %v330_v9, %v315_v23 }
 0x170   :  { %v352_v29 = vadd.f32 %v350_v22, %v332_v25 }
 0x171   :  { %v353_v30 = vadd.f32 %v351_v24, %v333_v27 }
 0x172   :  { %v366_v31 = vadd.f32 %v359_v26, %v352_v29 }
 0x173   :  { %v367_v32 = vadd.f32 %v363_v28, %v353_v30 }
 0x174   :  { %368 = vst [vmem:[#allocation6] sm:$0xff] %v366_v31 }
 0x175   :  { %369 = vst [vmem:[#allocation6 + $0x8] sm:$0xff] %v367_v32 }
 0x176   :  { %556 = shalt.err (!%p553_p12)
}
 0x177   :  { %s557_s21 = scalar_lea.hbm %s657_s5, 256 }
 0x178   :  { %p558_p13 = scmp.ne.s32.totalorder %s657_s5, %s557_s21  ;;  %p561_p0 = scmp.lt.u32.totalorder %s557_s21, %s657_s5 }
 0x17a   :  { %p563_p1 = pnand %p561_p0, %p558_p13 }
 0x17c   :  { %566 = shalt.err (!%p563_p1)
}
 0x17d   :  { %379 = dma.vmem_to_hbm [thread:$0]  %s377_s3, 256, %s657_s5, [#allocation5]  }
 0x17e   :  { %569 = dma.done.wait [#allocation5], 256  }
 0x17f   :  { %570 = vsyncadd [#allocation5], 4294967040 }
 0x180   :  { %383 = vsyncpa [#allocation4], 1 }
 0x181   :  { %384 = vsyncpa [#allocation5], 1 }

</bundles_post_ra>
